<compile_context>
chip_gen: v5e
topology: v5e:2x2
jax: 0.10.0
libtpu: 0.0.40
codegen_flags: <defaults>
</compile_context>

<pallas_src>
import functools

import jax
import jax.numpy as jnp
from jax.experimental import pallas as pl
from jax.experimental.pallas import tpu as pltpu


def _linear_hardsigmoid_kernel(xT_ref, w_ref, b_ref, oT_ref):
    # xT_ref: (IN, TB)   w_ref: (OUT, IN)   b_ref: (OUT, 1)   oT_ref: (OUT, TB)
    y = jnp.dot(w_ref[...], xT_ref[...], preferred_element_type=jnp.float32)
    y = y + b_ref[...]                                   # bias already carries the +3
    oT_ref[...] = (jnp.clip(y, 0.0, 6.0) * (1.0 / 6.0)).astype(oT_ref.dtype)


@functools.partial(jax.jit, static_argnames=("tb",))
def linear_hardsigmoid(x, weight, bias, *, tb=512):
    """x: (B, IN) f32, weight: (OUT, IN) f32 (PyTorch layout), bias: (OUT,) f32."""
    B, IN = x.shape
    OUT = weight.shape[0]

    # Fold the +3 into the bias (one-time, host/XLA side, not a per-tile op).
    b3 = (bias.astype(jnp.float32) + 3.0).reshape(OUT, 1)

    # Pad batch to a multiple of the tile width so every tile is lane-dense.
    n_tiles = pl.cdiv(B, tb)
    B_pad = n_tiles * tb
    xT = jnp.zeros((IN, B_pad), x.dtype).at[:, :B].set(x.T)

    outT = pl.pallas_call(
        _linear_hardsigmoid_kernel,
        out_shape=jax.ShapeDtypeStruct((OUT, B_pad), x.dtype),
        grid=(n_tiles,),
        in_specs=[
            pl.BlockSpec((IN, tb), lambda i: (0, i)),     # streamed x^T tile
            pl.BlockSpec((OUT, IN), lambda i: (0, 0)),    # resident weight
            pl.BlockSpec((OUT, 1), lambda i: (0, 0)),     # resident (bias + 3)
        ],
        out_specs=pl.BlockSpec((OUT, tb), lambda i: (0, i)),
        compiler_params=pltpu.CompilerParams(
            dimension_semantics=("parallel",),            # megacore-shard batch on v7x
        ),
    )(xT, weight, b3)

    return outT[:, :B].T


if __name__ == "__main__":
    key = jax.random.PRNGKey(0)
    kx, kw, kb = jax.random.split(key, 3)

    B, IN, OUT = 2, 13, 9

    # Deterministic parameter init (mimics nn.Linear's U(-1/sqrt(in), 1/sqrt(in))).
    bound = 1.0 / jnp.sqrt(jnp.float32(IN))
    weight = jax.random.uniform(kw, (OUT, IN), jnp.float32, -bound, bound)
    bias = jax.random.uniform(kb, (OUT,), jnp.float32, -bound, bound)

    x = jax.random.normal(kx, (B, IN), jnp.float32)

    out = linear_hardsigmoid(x, weight, bias)
    jax.block_until_ready(out)

    # Reference check in plain JAX (matches the PyTorch forward).
    ref = jnp.clip(x @ weight.T + bias + 3.0, 0.0, 6.0) / 6.0
    assert out.shape == (B, OUT)
    assert jnp.allclose(out, ref, atol=1e-5, rtol=1e-5)

    # Secondary check: exercise the multi-tile / padded streaming path.
    x_big = jax.random.normal(kx, (700, IN), jnp.float32)
    out_big = linear_hardsigmoid(x_big, weight, bias)
    jax.block_until_ready(out_big)
    ref_big = jnp.clip(x_big @ weight.T + bias + 3.0, 0.0, 6.0) / 6.0
    assert out_big.shape == (700, OUT)
    assert jnp.allclose(out_big, ref_big, atol=1e-5, rtol=1e-5)

    print("KERNEL_OK")
</pallas_src>

<mosaic_0001>
module attributes {stable_mosaic.version = 11 : i64} {
  func.func @_linear_hardsigmoid_kernel(%arg0: i32, %arg1: memref<13x512xf32, #tpu.memory_space<vmem>>, %arg2: memref<9x13xf32, #tpu.memory_space<vmem>>, %arg3: memref<9x1xf32, #tpu.memory_space<vmem>>, %arg4: memref<9x512xf32, #tpu.memory_space<vmem>>) attributes {dimension_semantics = [#tpu.dimension_semantics<parallel>], iteration_bounds = array<i64: 1>, scalar_prefetch = 0 : i64, scratch_operands = 0 : i64, tpu.core_type = #tpu.core_type<tc>, window_params = [{transform_indices = @transform_0, window_bounds = array<i64: 13, 512>}, {pipeline_mode = #tpu.pipeline_mode<synchronous>, transform_indices = @transform_1, window_bounds = array<i64: 9, 13>}, {pipeline_mode = #tpu.pipeline_mode<synchronous>, transform_indices = @transform_2, window_bounds = array<i64: 9, 1>}, {transform_indices = @transform_3, window_bounds = array<i64: 9, 512>}]} {
    %c0 = arith.constant 0 : index
    %c0_0 = arith.constant 0 : index
    %0 = vector.load %arg2[%c0, %c0_0] : memref<9x13xf32, #tpu.memory_space<vmem>>, vector<9x13xf32>
    %c0_1 = arith.constant 0 : index
    %c0_2 = arith.constant 0 : index
    %1 = vector.load %arg1[%c0_1, %c0_2] : memref<13x512xf32, #tpu.memory_space<vmem>>, vector<13x512xf32>
    %cst = arith.constant dense<0.000000e+00> : vector<9x512xf32>
    %2 = tpu.matmul %0, %1, %cst {dimension_numbers = #tpu.dot_dimension_numbers<[1], [0], [0], [1], [0, 0, 1, 1], [], []>} : vector<9x13xf32>, vector<13x512xf32>, vector<9x512xf32> -> vector<9x512xf32>
    %c0_3 = arith.constant 0 : index
    %c0_4 = arith.constant 0 : index
    %3 = vector.load %arg3[%c0_3, %c0_4] : memref<9x1xf32, #tpu.memory_space<vmem>>, vector<9x1xf32>
    %4 = vector.broadcast %3 : vector<9x1xf32> to vector<9x512xf32>
    %5 = arith.addf %2, %4 : vector<9x512xf32>
    %cst_5 = arith.constant 0.000000e+00 : f32
    %cst_6 = arith.constant 6.000000e+00 : f32
    %6 = vector.broadcast %cst_5 : f32 to vector<9x512xf32>
    %7 = arith.maximumf %6, %5 : vector<9x512xf32>
    %8 = vector.broadcast %cst_6 : f32 to vector<9x512xf32>
    %9 = arith.minimumf %8, %7 : vector<9x512xf32>
    %cst_7 = arith.constant 0.166666672 : f32
    %10 = vector.broadcast %cst_7 : f32 to vector<9x512xf32>
    %11 = arith.mulf %9, %10 : vector<9x512xf32>
    %c0_8 = arith.constant 0 : index
    %c0_9 = arith.constant 0 : index
    %12 = vector.load %arg4[%c0_8, %c0_9] : memref<9x512xf32, #tpu.memory_space<vmem>>, vector<9x512xf32>
    tpu.vector_store %arg4[%c0_8, %c0_9], %11 {strides = array<i32>} : memref<9x512xf32, #tpu.memory_space<vmem>>, vector<9x512xf32>,
    return
  }
  func.func @transform_0(%arg0: i32) -> (i32, i32) {
    %c0_i32 = arith.constant 0 : i32
    %c0_i32_0 = arith.constant 0 : i32
    return %c0_i32, %arg0 : i32, i32
  }
  func.func @transform_1(%arg0: i32) -> (i32, i32) {
    %c0_i32 = arith.constant 0 : i32
    %c0_i32_0 = arith.constant 0 : i32
    %c0_i32_1 = arith.constant 0 : i32
    return %c0_i32, %c0_i32_0 : i32, i32
  }
  func.func @transform_2(%arg0: i32) -> (i32, i32) {
    %c0_i32 = arith.constant 0 : i32
    %c0_i32_0 = arith.constant 0 : i32
    %c0_i32_1 = arith.constant 0 : i32
    return %c0_i32, %c0_i32_0 : i32, i32
  }
  func.func @transform_3(%arg0: i32) -> (i32, i32) {
    %c0_i32 = arith.constant 0 : i32
    %c0_i32_0 = arith.constant 0 : i32
    return %c0_i32, %arg0 : i32, i32
  }
}

</mosaic_0001>

<bundles_post_ra>
// kernel: linear_hardsigmoid.1
= control target key start
LH: loop header
LB: loop body
LE: loop exit
PB: predicated region body
PF: predicated region fallthrough
CT: control target
= control target key end

     0   :  { %vm43_vm0 = vcmask 1044480   ;;  %v198_v3 = vmov 0   ;;  %vm36_vm1 = vcmask 105472   ;;  %s287_s0 = inlined_call_operand.vmem [shape: f32[13,512], index: 0, kind: input, shape index: {}]   ;;  %s288_s1 = inlined_call_operand.vmem [shape: f32[9,13], index: 1, kind: input, shape index: {}]   ;;  %s289_s2 = inlined_call_operand.vmem [shape: f32[9,1], index: 2, kind: input, shape index: {}]   ;;  %s290_s3 = inlined_call_operand.vmem [shape: f32[9,512], index: 3, kind: output, shape index: {}]  }
   0x1   :  { %v20_v0 = vld [vmem:[%s287_s0 + $0x20] sm:$0x1f]  ;;  %v21_v1 = vld [vmem:[%s287_s0 + $0x28] sm:$0x1f]  ;;  %v22_v2 = vld [vmem:[%s287_s0 + $0x30] sm:$0x1f]  ;;  %197 = vset.pattern.permute.xlu0 %v198_v3 }
   0x2   :  { %184 = vmatpush.msk.msra.mxu0 %vm43_vm0, %v20_v0  ;;  %187 = vmatpush.msk.msra.mxu1 %vm43_vm0, %v21_v1  ;;  %v23_v4 = vld [vmem:[%s287_s0 + $0x38] sm:$0x1f]  ;;  %v16_v5 = vld [vmem:[%s287_s0] sm:$0xff]  ;;  %v17_v6 = vld [vmem:[%s287_s0 + $0x8] sm:$0xff] }
   0x3   :  { %190 = vmatpush.msk.msra.mxu2 %vm43_vm0, %v22_v2  ;;  %193 = vmatpush.msk.msra.mxu3 %vm43_vm0, %v23_v4  ;;  %v18_v7 = vld [vmem:[%s287_s0 + $0x10] sm:$0xff]  ;;  %v19_v8 = vld [vmem:[%s287_s0 + $0x18] sm:$0xff]  ;;  %v14_v9 = vld [vmem:[%s288_s1] sm:$0xff] }
   0x4   :  { %71 = vmatpush.msra.mxu0 %v16_v5  ;;  %94 = vmatpush.msra.mxu1 %v17_v6  ;;  %v24_v10 = vld [vmem:[%s289_s2] sm:$0xff]  ;;  %v15_v11 = vld [vmem:[%s288_s1 + $0x8] sm:$0x1] }
   0x5   :  { %117 = vmatpush.msra.mxu2 %v18_v7  ;;  %140 = vmatpush.msra.mxu3 %v19_v8  ;;  %v25_v12 = vld [vmem:[%s289_s2 + $0x8] sm:$0x1] }
   0x6   :  { %185 = vmatmul.msk.f32.vlgmr.msra.gmra.mxu0 %vm36_vm1, %v14_v9  ;;  %188 = vmatmul.msk.f32.vlgmr.msra.gmra.mxu1 %vm36_vm1, %v14_v9 }
   0x7   :  { %191 = vmatmul.msk.f32.vlgmr.msra.gmra.mxu2 %vm36_vm1, %v14_v9  ;;  %194 = vmatmul.msk.f32.vlgmr.msra.gmra.mxu3 %vm36_vm1, %v14_v9 }
   0x8   :  { %28 = vperm.xlu0 %197, %v24_v10  }
   0xe   :  { %186 = vmatmul.msk.f32.gmra.mxu0 %vm36_vm1, %v15_v11  ;;  %189 = vmatmul.msk.f32.gmra.mxu1 %vm36_vm1, %v15_v11 }
   0xf   :  { %192 = vmatmul.msk.f32.gmra.mxu2 %vm36_vm1, %v15_v11  ;;  %195 = vmatmul.msk.f32.gmra.mxu3 %vm36_vm1, %v15_v11 }
  0x10   :  { %33 = vperm.xlu0 %197, %v25_v12  }
  0x7a   :  { %v29_v13 = vpop.permute.xlu0 %28 }
  0x82   :  { %v34_v22 = vpop.permute.xlu0 %33 }
  0x83   :  { %v73_v14 = vpop.f32.mrf.mxu0  ;;  %v96_v15 = vpop.f32.mrf.mxu1 }
  0x84   :  { %v74_v16 = vadd.f32 %v73_v14, %v29_v13  ;;  %v97_v17 = vadd.f32 %v96_v15, %v29_v13 }
  0x86   :  { %v148_v18 = vmax.f32 %v74_v16, 0.0  ;;  %v149_v19 = vmax.f32 %v97_v17, 0.0 }
  0x88   :  { %v156_v20 = vmin.f32 %v148_v18, 6.0  ;;  %v157_v21 = vmin.f32 %v149_v19, 6.0 }
  0x8a   :  { %v164_v23 = vmul.f32 0.16666667, %v156_v20  ;;  %v165_v24 = vmul.f32 0.16666667, %v157_v21  ;;  %v119_v25 = vpop.f32.mrf.mxu2  ;;  %v142_v26 = vpop.f32.mrf.mxu3 }
  0x8b   :  { %v120_v27 = vadd.f32 %v119_v25, %v29_v13  ;;  %v143_v28 = vadd.f32 %v142_v26, %v29_v13  ;;  %v76_v29 = vpop.f32.mrf.mxu0  ;;  %v99_v30 = vpop.f32.mrf.mxu1 }
  0x8c   :  { %172 = vst [vmem:[%s290_s3] sm:$0xff] %v164_v23  ;;  %v77_v31 = vadd.f32 %v76_v29, %v34_v22  ;;  %v100_v32 = vadd.f32 %v99_v30, %v34_v22 }
  0x8d   :  { %173 = vst [vmem:[%s290_s3 + $0x8] sm:$0xff] %v165_v24  ;;  %v150_v33 = vmax.f32 %v120_v27, 0.0  ;;  %v151_v34 = vmax.f32 %v143_v28, 0.0 }
  0x8e   :  { %v152_v35 = vmax.f32 %v77_v31, 0.0  ;;  %v153_v36 = vmax.f32 %v100_v32, 0.0 }
  0x8f   :  { %v158_v37 = vmin.f32 %v150_v33, 6.0  ;;  %v159_v38 = vmin.f32 %v151_v34, 6.0 }
  0x90   :  { %v160_v39 = vmin.f32 %v152_v35, 6.0  ;;  %v161_v40 = vmin.f32 %v153_v36, 6.0 }
  0x91   :  { %v166_v41 = vmul.f32 0.16666667, %v158_v37  ;;  %v167_v42 = vmul.f32 0.16666667, %v159_v38 }
  0x92   :  { %v168_v43 = vmul.f32 0.16666667, %v160_v39  ;;  %v169_v44 = vmul.f32 0.16666667, %v161_v40  ;;  %v122_v45 = vpop.f32.mrf.mxu2  ;;  %v145_v46 = vpop.f32.mrf.mxu3 }
  0x93   :  { %174 = vst [vmem:[%s290_s3 + $0x10] sm:$0xff] %v166_v41  ;;  %v123_v47 = vadd.f32 %v122_v45, %v34_v22  ;;  %v146_v48 = vadd.f32 %v145_v46, %v34_v22 }
  0x94   :  { %175 = vst [vmem:[%s290_s3 + $0x18] sm:$0xff] %v167_v42 }
  0x95   :  { %176 = vst [vmem:[%s290_s3 + $0x20] sm:$0x1] %v168_v43  ;;  %v154_v49 = vmax.f32 %v123_v47, 0.0  ;;  %v155_v50 = vmax.f32 %v146_v48, 0.0 }
  0x96   :  { %177 = vst [vmem:[%s290_s3 + $0x28] sm:$0x1] %v169_v44 }
  0x97   :  { %v162_v51 = vmin.f32 %v154_v49, 6.0  ;;  %v163_v52 = vmin.f32 %v155_v50, 6.0 }
  0x99   :  { %v170_v53 = vmul.f32 0.16666667, %v162_v51  ;;  %v171_v54 = vmul.f32 0.16666667, %v163_v52 }
  0x9b   :  { %178 = vst [vmem:[%s290_s3 + $0x30] sm:$0x1] %v170_v53 }
  0x9c   :  { %179 = vst [vmem:[%s290_s3 + $0x38] sm:$0x1] %v171_v54 }

</bundles_post_ra>
